<compile_context>
chip_gen: v5e
topology: v5e:2x2
jax: 0.10.0
libtpu: 0.0.40
codegen_flags: <defaults>
</compile_context>

<pallas_src>
import functools
import math

import jax
import jax.numpy as jnp
from jax import lax
from jax.experimental import pallas as pl
from jax.experimental.pallas import tpu as pltpu

_LANE = 128
_SUBLANE_PAD = 16       # channel padding (safe for both f32 (8,128) and bf16 (16,128) tiling)
_MAX_TILE_L = 512       # cap L tile so double-buffered tiles stay small (v7x 64 MiB VMEM)
_BN_EPS = 1e-5
_LEAKY_SLOPE = 0.01


def _round_up(x, m):
    return (x + m - 1) // m * m


def _pick_tile(w_pad):
    if w_pad <= _MAX_TILE_L:
        return w_pad
    for cand in (512, 384, 256, 128):
        if w_pad % cand == 0:
            return cand
    return _LANE


def _overlapping_tiles(x, pad_left, pad_right, n_tiles, tile_l, win):
    """(B, C, L) -> (B, n_tiles, C, win) overlapping windows (halo = K-1 columns).

    Only the halo is duplicated (~(win/tile_l - 1) extra bytes), NOT the K-fold
    blow-up of a full im2col.
    """
    xp = jnp.pad(x, ((0, 0), (0, 0), (pad_left, pad_right)))
    if n_tiles == 1:
        return xp[:, None, :, :]
    return jnp.stack(
        [xp[:, :, i * tile_l:i * tile_l + win] for i in range(n_tiles)], axis=1)


def _conv_weight_2d_to_mxu(w4, cout_p, cin_p, dtype):
    """(C_out, C_in, 1, K) torch Conv2d weight -> (cout_p, K*cin_p), contraction (k, ci)."""
    co, ci, _, k = w4.shape
    w = jnp.squeeze(w4, axis=2)
    w = jnp.pad(w, ((0, cout_p - co), (0, cin_p - ci), (0, 0)))
    w = jnp.transpose(w, (0, 2, 1)).reshape(cout_p, k * cin_p)
    return w.astype(dtype)


def _bn_scale_shift(gamma, beta, mean, var, c_pad):
    scale = gamma / jnp.sqrt(var + _BN_EPS)
    shift = beta - mean * scale
    scale = jnp.pad(scale, (0, c_pad - scale.shape[0])).reshape(c_pad, 1)
    shift = jnp.pad(shift, (0, c_pad - shift.shape[0])).reshape(c_pad, 1)
    return scale.astype(jnp.float32), shift.astype(jnp.float32)


# ----------------------------- Pallas kernels ------------------------------


def _conv_bn_lrelu_kernel(x_ref, w_ref, s_ref, t_ref, o_ref, *, ksize, tile_l, w_valid):
    """conv(1xK, SAME) + inference-BN + leaky_relu for one (row, L-tile).

    x_ref : (C_in_p, tile_l + K - 1)   input window incl. halo
    w_ref : (C_out_p, K * C_in_p)      one fused MXU contraction
    s/t   : (C_out_p, 1)               BN scale / shift (f32)
    o_ref : (C_out_p, tile_l)          lane-dense (tile_l % 128 == 0)
    """
    cols = [x_ref[:, k:k + tile_l] for k in range(ksize)]      # static shifted views
    xcol = jnp.concatenate(cols, axis=0)                        # (K*C_in_p, tile_l)
    acc = jnp.dot(w_ref[...], xcol, preferred_element_type=jnp.float32)
    y = acc * s_ref[...] + t_ref[...]
    y = jnp.where(y >= 0, y, _LEAKY_SLOPE * y)
    # Zero the lane-pad region [w_valid, W_pad): conv2 must see zero padding
    # *after* the activation (matches PyTorch zero-padded conv on activations).
    pos = pl.program_id(1) * tile_l + lax.broadcasted_iota(jnp.int32, y.shape, 1)
    y = jnp.where(pos < w_valid, y, 0.0)
    o_ref[...] = y.astype(o_ref.dtype)


def _conv_bn_lrelu_residual_kernel(y_ref, xid_ref, w_ref, s_ref, t_ref,
                                   wid_ref, bid_ref, o_ref, *, ksize, tile_l):
    """conv2 + BN2 + leaky_relu fused with the 1x1 identity conv + bias + residual add."""
    cols = [y_ref[:, k:k + tile_l] for k in range(ksize)]
    xcol = jnp.concatenate(cols, axis=0)
    acc = jnp.dot(w_ref[...], xcol, preferred_element_type=jnp.float32)
    y = acc * s_ref[...] + t_ref[...]
    y = jnp.where(y >= 0, y, _LEAKY_SLOPE * y)
    idn = jnp.dot(wid_ref[...], xid_ref[...], preferred_element_type=jnp.float32) + bid_ref[...]
    o_ref[...] = (y + idn).astype(o_ref.dtype)


# ------------------------------- wrapper ------------------------------------


def my_residual_block_2d(x, w1, g1, b1, m1, v1, w2, g2, b2, m2, v2, w_id, b_id,
                         *, compute_dtype=jnp.float32):
    """Forward of MyResidualBlock2D (downsample=False, upsample=False, groups=1).

    x    : (N, C_in, H, W)
    w1   : (C_out, C_in, 1, K)   conv1 weight (no bias)
    w2   : (C_out, C_out, 1, K)  conv2 weight (no bias)
    w_id : (C_out, C_in, 1, 1)   identity 1x1 conv weight,  b_id : (C_out,)
    g/b/m/v : BatchNorm gamma / beta / running_mean / running_var
    """
    n, c_in, h, w = x.shape
    c_out, _, _, ksize = w1.shape
    pad = (ksize - 1) // 2
    assert w2.shape == (c_out, c_out, 1, ksize)
    assert w_id.shape == (c_out, c_in, 1, 1)

    rows = n * h
    cin_p = _round_up(c_in, _SUBLANE_PAD)
    cout_p = _round_up(c_out, _SUBLANE_PAD)
    w_pad = _round_up(w, _LANE)
    tile_l = _pick_tile(w_pad)
    n_tiles = w_pad // tile_l
    win = tile_l + ksize - 1

    # (N, C, H, W) -> (N*H, C_pad, W): the (1, K) conv acts per (batch, H) row.
    xr = jnp.transpose(x, (0, 2, 1, 3)).reshape(rows, c_in, w)
    xr = jnp.pad(xr, ((0, 0), (0, cin_p - c_in), (0, 0)))

    x1_tiles = _overlapping_tiles(xr.astype(compute_dtype), pad, w_pad - w + pad,
                                  n_tiles, tile_l, win)
    x_id = jnp.pad(xr, ((0, 0), (0, 0), (0, w_pad - w))).astype(compute_dtype)

    w1_m = _conv_weight_2d_to_mxu(w1, cout_p, cin_p, compute_dtype)
    w2_m = _conv_weight_2d_to_mxu(w2, cout_p, cout_p, compute_dtype)
    wid_m = jnp.pad(w_id[:, :, 0, 0],
                    ((0, cout_p - c_out), (0, cin_p - c_in))).astype(compute_dtype)
    bid_m = jnp.pad(b_id, (0, cout_p - c_out)).reshape(cout_p, 1).astype(jnp.float32)
    s1, t1 = _bn_scale_shift(g1, b1, m1, v1, cout_p)
    s2, t2 = _bn_scale_shift(g2, b2, m2, v2, cout_p)

    grid = (rows, n_tiles)
    cparams = pltpu.CompilerParams(
        dimension_semantics=("parallel", "parallel"),
        vmem_limit_bytes=32 * 1024 * 1024)

    # ---- stage 1: y1 = leaky_relu(bn1(conv1(x))) ----
    y1 = pl.pallas_call(
        functools.partial(_conv_bn_lrelu_kernel, ksize=ksize, tile_l=tile_l, w_valid=w),
        out_shape=jax.ShapeDtypeStruct((rows, cout_p, w_pad), compute_dtype),
        grid=grid,
        in_specs=[
            pl.BlockSpec((None, None, cin_p, win), lambda r, t: (r, t, 0, 0)),
            pl.BlockSpec((cout_p, ksize * cin_p), lambda r, t: (0, 0)),   # resident
            pl.BlockSpec((cout_p, 1), lambda r, t: (0, 0)),               # resident
            pl.BlockSpec((cout_p, 1), lambda r, t: (0, 0)),               # resident
        ],
        out_specs=pl.BlockSpec((None, cout_p, tile_l), lambda r, t: (r, 0, t)),
        compiler_params=cparams,
    )(x1_tiles, w1_m, s1, t1)

    # ---- stage 2: out_pre = leaky_relu(bn2(conv2(y1))) + (W_id @ x + b_id) ----
    y1_tiles = _overlapping_tiles(y1, pad, pad, n_tiles, tile_l, win)
    out_pre = pl.pallas_call(
        functools.partial(_conv_bn_lrelu_residual_kernel, ksize=ksize, tile_l=tile_l),
        out_shape=jax.ShapeDtypeStruct((rows, cout_p, w_pad), jnp.float32),
        grid=grid,
        in_specs=[
            pl.BlockSpec((None, None, cout_p, win), lambda r, t: (r, t, 0, 0)),
            pl.BlockSpec((None, cin_p, tile_l), lambda r, t: (r, 0, t)),
            pl.BlockSpec((cout_p, ksize * cout_p), lambda r, t: (0, 0)),  # resident
            pl.BlockSpec((cout_p, 1), lambda r, t: (0, 0)),
            pl.BlockSpec((cout_p, 1), lambda r, t: (0, 0)),
            pl.BlockSpec((cout_p, cin_p), lambda r, t: (0, 0)),
            pl.BlockSpec((cout_p, 1), lambda r, t: (0, 0)),
        ],
        out_specs=pl.BlockSpec((None, cout_p, tile_l), lambda r, t: (r, 0, t)),
        compiler_params=cparams,
    )(y1_tiles, x_id, w2_m, s2, t2, wid_m, bid_m)

    out = out_pre[:, :c_out, :w]
    # TODO(synk): exact-erf GELU (nn.GELU() default) applied in XLA here; Mosaic erf
    # lowering inside the kernel is not guaranteed across jax versions.
    out = jax.nn.gelu(out, approximate=False)
    return jnp.transpose(out.reshape(n, h, c_out, w), (0, 2, 1, 3))


# ------------------------------ reference -----------------------------------


def _reference_block(x, w1, g1, b1, m1, v1, w2, g2, b2, m2, v2, w_id, b_id):
    """Pure-JAX/XLA reference mirroring the PyTorch forward (inference-mode BN)."""
    ksize = w1.shape[-1]
    pad = (ksize - 1) // 2

    def conv(inp, wt, p):
        return lax.conv_general_dilated(
            inp, wt, window_strides=(1, 1), padding=[(0, 0), (p, p)],
            dimension_numbers=("NCHW", "OIHW", "NCHW"),
            precision=lax.Precision.HIGHEST)

    def bn(z, g, b, m, v):
        inv = g / jnp.sqrt(v + _BN_EPS)
        return z * inv.reshape(1, -1, 1, 1) + (b - m * inv).reshape(1, -1, 1, 1)

    def lrelu(z):
        return jnp.where(z >= 0, z, _LEAKY_SLOPE * z)

    hid = lrelu(bn(conv(x, w1, pad), g1, b1, m1, v1))
    hid = lrelu(bn(conv(hid, w2, pad), g2, b2, m2, v2))
    identity = conv(x, w_id, 0) + b_id.reshape(1, -1, 1, 1)
    return jax.nn.gelu(hid + identity, approximate=False)


if __name__ == "__main__":
    N, C_IN, H, W = 2, 4, 3, 16
    C_OUT, K = 8, 9

    key = jax.random.PRNGKey(0)
    ks = jax.random.split(key, 13)

    def u(k, shape, bound):
        return jax.random.uniform(k, shape, jnp.float32, -bound, bound)

    x = jax.random.normal(ks[0], (N, C_IN, H, W), jnp.float32)
    w1 = u(ks[1], (C_OUT, C_IN, 1, K), 1.0 / math.sqrt(C_IN * K))
    w2 = u(ks[2], (C_OUT, C_OUT, 1, K), 1.0 / math.sqrt(C_OUT * K))
    w_id = u(ks[3], (C_OUT, C_IN, 1, 1), 1.0 / math.sqrt(C_IN))
    b_id = u(ks[4], (C_OUT,), 1.0 / math.sqrt(C_IN))
    g1 = jax.random.uniform(ks[5], (C_OUT,), jnp.float32, 0.5, 1.5)
    b1 = u(ks[6], (C_OUT,), 0.5)
    m1 = 0.3 * jax.random.normal(ks[7], (C_OUT,), jnp.float32)
    v1 = jax.random.uniform(ks[8], (C_OUT,), jnp.float32, 0.5, 1.5)
    g2 = jax.random.uniform(ks[9], (C_OUT,), jnp.float32, 0.5, 1.5)
    b2 = u(ks[10], (C_OUT,), 0.5)
    m2 = 0.3 * jax.random.normal(ks[11], (C_OUT,), jnp.float32)
    v2 = jax.random.uniform(ks[12], (C_OUT,), jnp.float32, 0.5, 1.5)

    args = (x, w1, g1, b1, m1, v1, w2, g2, b2, m2, v2, w_id, b_id)

    ref = _reference_block(*args)

    out_f32 = jax.block_until_ready(
        jax.jit(functools.partial(my_residual_block_2d,
                                  compute_dtype=jnp.float32))(*args))
    assert out_f32.shape == (N, C_OUT, H, W), out_f32.shape
    assert jnp.allclose(out_f32, ref, atol=1e-4, rtol=1e-4), (
        float(jnp.max(jnp.abs(out_f32 - ref))))

    # bf16 MXU path (f32 accumulation / epilogue) -- loose tolerance.
    out_bf16 = jax.block_until_ready(
        jax.jit(functools.partial(my_residual_block_2d,
                                  compute_dtype=jnp.bfloat16))(*args))
    assert jnp.allclose(out_bf16, ref, atol=5e-2, rtol=5e-2), (
        float(jnp.max(jnp.abs(out_bf16 - ref))))

    print("KERNEL_OK")
</pallas_src>

<mosaic_0001>
module attributes {stable_mosaic.version = 11 : i64} {
  func.func @_conv_bn_lrelu_kernel(%arg0: i32, %arg1: i32, %arg2: memref<1x1x16x136xf32, #tpu.memory_space<vmem>>, %arg3: memref<16x144xf32, #tpu.memory_space<vmem>>, %arg4: memref<16x1xf32, #tpu.memory_space<vmem>>, %arg5: memref<16x1xf32, #tpu.memory_space<vmem>>, %arg6: memref<1x16x128xf32, #tpu.memory_space<vmem>>) attributes {dimension_semantics = [#tpu.dimension_semantics<parallel>, #tpu.dimension_semantics<parallel>], iteration_bounds = array<i64: 6, 1>, scalar_prefetch = 0 : i64, scratch_operands = 0 : i64, tpu.core_type = #tpu.core_type<tc>, window_params = [{transform_indices = @transform_0, window_bounds = array<i64: 1, 1, 16, 136>}, {pipeline_mode = #tpu.pipeline_mode<synchronous>, transform_indices = @transform_1, window_bounds = array<i64: 16, 144>}, {pipeline_mode = #tpu.pipeline_mode<synchronous>, transform_indices = @transform_2, window_bounds = array<i64: 16, 1>}, {pipeline_mode = #tpu.pipeline_mode<synchronous>, transform_indices = @transform_3, window_bounds = array<i64: 16, 1>}, {transform_indices = @transform_4, window_bounds = array<i64: 1, 16, 128>}]} {
    %c0 = arith.constant 0 : index
    %c0_0 = arith.constant 0 : index
    %c0_1 = arith.constant 0 : index
    %c0_2 = arith.constant 0 : index
    %0 = vector.load %arg2[%c0, %c0_0, %c0_1, %c0_2] : memref<1x1x16x136xf32, #tpu.memory_space<vmem>>, vector<1x1x16x128xf32>
    %1 = vector.shape_cast %0 : vector<1x1x16x128xf32> to vector<16x128xf32>
    %c0_3 = arith.constant 0 : index
    %c0_4 = arith.constant 0 : index
    %c0_5 = arith.constant 0 : index
    %c1 = arith.constant 1 : index
    %2 = vector.load %arg2[%c0_3, %c0_4, %c0_5, %c1] : memref<1x1x16x136xf32, #tpu.memory_space<vmem>>, vector<1x1x16x128xf32>
    %3 = vector.shape_cast %2 : vector<1x1x16x128xf32> to vector<16x128xf32>
    %c0_6 = arith.constant 0 : index
    %c0_7 = arith.constant 0 : index
    %c0_8 = arith.constant 0 : index
    %c2 = arith.constant 2 : index
    %4 = vector.load %arg2[%c0_6, %c0_7, %c0_8, %c2] : memref<1x1x16x136xf32, #tpu.memory_space<vmem>>, vector<1x1x16x128xf32>
    %5 = vector.shape_cast %4 : vector<1x1x16x128xf32> to vector<16x128xf32>
    %c0_9 = arith.constant 0 : index
    %c0_10 = arith.constant 0 : index
    %c0_11 = arith.constant 0 : index
    %c3 = arith.constant 3 : index
    %6 = vector.load %arg2[%c0_9, %c0_10, %c0_11, %c3] : memref<1x1x16x136xf32, #tpu.memory_space<vmem>>, vector<1x1x16x128xf32>
    %7 = vector.shape_cast %6 : vector<1x1x16x128xf32> to vector<16x128xf32>
    %c0_12 = arith.constant 0 : index
    %c0_13 = arith.constant 0 : index
    %c0_14 = arith.constant 0 : index
    %c4 = arith.constant 4 : index
    %8 = vector.load %arg2[%c0_12, %c0_13, %c0_14, %c4] : memref<1x1x16x136xf32, #tpu.memory_space<vmem>>, vector<1x1x16x128xf32>
    %9 = vector.shape_cast %8 : vector<1x1x16x128xf32> to vector<16x128xf32>
    %c0_15 = arith.constant 0 : index
    %c0_16 = arith.constant 0 : index
    %c0_17 = arith.constant 0 : index
    %c5 = arith.constant 5 : index
    %10 = vector.load %arg2[%c0_15, %c0_16, %c0_17, %c5] : memref<1x1x16x136xf32, #tpu.memory_space<vmem>>, vector<1x1x16x128xf32>
    %11 = vector.shape_cast %10 : vector<1x1x16x128xf32> to vector<16x128xf32>
    %c0_18 = arith.constant 0 : index
    %c0_19 = arith.constant 0 : index
    %c0_20 = arith.constant 0 : index
    %c6 = arith.constant 6 : index
    %12 = vector.load %arg2[%c0_18, %c0_19, %c0_20, %c6] : memref<1x1x16x136xf32, #tpu.memory_space<vmem>>, vector<1x1x16x128xf32>
    %13 = vector.shape_cast %12 : vector<1x1x16x128xf32> to vector<16x128xf32>
    %c0_21 = arith.constant 0 : index
    %c0_22 = arith.constant 0 : index
    %c0_23 = arith.constant 0 : index
    %c7 = arith.constant 7 : index
    %14 = vector.load %arg2[%c0_21, %c0_22, %c0_23, %c7] : memref<1x1x16x136xf32, #tpu.memory_space<vmem>>, vector<1x1x16x128xf32>
    %15 = vector.shape_cast %14 : vector<1x1x16x128xf32> to vector<16x128xf32>
    %c0_24 = arith.constant 0 : index
    %c0_25 = arith.constant 0 : index
    %c0_26 = arith.constant 0 : index
    %c8 = arith.constant 8 : index
    %16 = vector.load %arg2[%c0_24, %c0_25, %c0_26, %c8] : memref<1x1x16x136xf32, #tpu.memory_space<vmem>>, vector<1x1x16x128xf32>
    %17 = vector.shape_cast %16 : vector<1x1x16x128xf32> to vector<16x128xf32>
    %18 = tpu.concatenate %1, %3, %5, %7, %9, %11, %13, %15, %17 in 0 : vector<16x128xf32>, vector<16x128xf32>, vector<16x128xf32>, vector<16x128xf32>, vector<16x128xf32>, vector<16x128xf32>, vector<16x128xf32>, vector<16x128xf32>, vector<16x128xf32> -> vector<144x128xf32>
    %c0_27 = arith.constant 0 : index
    %c0_28 = arith.constant 0 : index
    %19 = vector.load %arg3[%c0_27, %c0_28] : memref<16x144xf32, #tpu.memory_space<vmem>>, vector<16x144xf32>
    %cst = arith.constant dense<0.000000e+00> : vector<16x128xf32>
    %20 = tpu.matmul %19, %18, %cst {dimension_numbers = #tpu.dot_dimension_numbers<[1], [0], [0], [1], [0, 0, 1, 1], [], []>} : vector<16x144xf32>, vector<144x128xf32>, vector<16x128xf32> -> vector<16x128xf32>
    %c0_29 = arith.constant 0 : index
    %c0_30 = arith.constant 0 : index
    %21 = vector.load %arg4[%c0_29, %c0_30] : memref<16x1xf32, #tpu.memory_space<vmem>>, vector<16x1xf32>
    %22 = vector.broadcast %21 : vector<16x1xf32> to vector<16x128xf32>
    %23 = arith.mulf %20, %22 : vector<16x128xf32>
    %c0_31 = arith.constant 0 : index
    %c0_32 = arith.constant 0 : index
    %24 = vector.load %arg5[%c0_31, %c0_32] : memref<16x1xf32, #tpu.memory_space<vmem>>, vector<16x1xf32>
    %25 = vector.broadcast %24 : vector<16x1xf32> to vector<16x128xf32>
    %26 = arith.addf %23, %25 : vector<16x128xf32>
    %cst_33 = arith.constant 0.000000e+00 : f32
    %27 = vector.broadcast %cst_33 : f32 to vector<16x128xf32>
    %28 = arith.cmpf oge, %26, %27 : vector<16x128xf32>
    %cst_34 = arith.constant 0.00999999977 : f32
    %29 = vector.broadcast %cst_34 : f32 to vector<16x128xf32>
    %30 = arith.mulf %29, %26 : vector<16x128xf32>
    %31 = arith.select %28, %26, %30 : vector<16x128xi1>, vector<16x128xf32>
    %c128_i32 = arith.constant 128 : i32
    %32 = arith.muli %arg1, %c128_i32 : i32
    %33 = tpu.iota {dimensions = array<i32: 1>} : vector<16x128xi32>
    %34 = vector.broadcast %32 : i32 to vector<16x128xi32>
    %35 = arith.addi %34, %33 : vector<16x128xi32>
    %c16_i32 = arith.constant 16 : i32
    %36 = vector.broadcast %c16_i32 : i32 to vector<16x128xi32>
    %37 = arith.cmpi slt, %35, %36 : vector<16x128xi32>
    %cst_35 = arith.constant 0.000000e+00 : f32
    %38 = vector.broadcast %cst_35 : f32 to vector<16x128xf32>
    %39 = arith.select %37, %31, %38 : vector<16x128xi1>, vector<16x128xf32>
    %c0_36 = arith.constant 0 : index
    %c0_37 = arith.constant 0 : index
    %c0_38 = arith.constant 0 : index
    %40 = vector.load %arg6[%c0_36, %c0_37, %c0_38] : memref<1x16x128xf32, #tpu.memory_space<vmem>>, vector<1x16x128xf32>
    %41 = vector.shape_cast %40 : vector<1x16x128xf32> to vector<16x128xf32>
    %42 = vector.shape_cast %39 : vector<16x128xf32> to vector<1x16x128xf32>
    tpu.vector_store %arg6[%c0_36, %c0_37, %c0_38], %42 {strides = array<i32>} : memref<1x16x128xf32, #tpu.memory_space<vmem>>, vector<1x16x128xf32>,
    return
  }
  func.func @transform_0(%arg0: i32, %arg1: i32) -> (i32, i32, i32, i32) {
    %c0_i32 = arith.constant 0 : i32
    %c0_i32_0 = arith.constant 0 : i32
    %c0_i32_1 = arith.constant 0 : i32
    return %arg0, %arg1, %c0_i32, %c0_i32_0 : i32, i32, i32, i32
  }
  func.func @transform_1(%arg0: i32, %arg1: i32) -> (i32, i32) {
    %c0_i32 = arith.constant 0 : i32
    %c0_i32_0 = arith.constant 0 : i32
    %c0_i32_1 = arith.constant 0 : i32
    return %c0_i32, %c0_i32_0 : i32, i32
  }
  func.func @transform_2(%arg0: i32, %arg1: i32) -> (i32, i32) {
    %c0_i32 = arith.constant 0 : i32
    %c0_i32_0 = arith.constant 0 : i32
    %c0_i32_1 = arith.constant 0 : i32
    return %c0_i32, %c0_i32_0 : i32, i32
  }
  func.func @transform_3(%arg0: i32, %arg1: i32) -> (i32, i32) {
    %c0_i32 = arith.constant 0 : i32
    %c0_i32_0 = arith.constant 0 : i32
    %c0_i32_1 = arith.constant 0 : i32
    return %c0_i32, %c0_i32_0 : i32, i32
  }
  func.func @transform_4(%arg0: i32, %arg1: i32) -> (i32, i32, i32) {
    %c0_i32 = arith.constant 0 : i32
    %c0_i32_0 = arith.constant 0 : i32
    return %arg0, %c0_i32, %arg1 : i32, i32, i32
  }
}

module attributes {stable_mosaic.version = 11 : i64} {
  func.func @_conv_bn_lrelu_residual_kernel(%arg0: i32, %arg1: i32, %arg2: memref<1x1x16x136xf32, #tpu.memory_space<vmem>>, %arg3: memref<1x16x128xf32, #tpu.memory_space<vmem>>, %arg4: memref<16x144xf32, #tpu.memory_space<vmem>>, %arg5: memref<16x1xf32, #tpu.memory_space<vmem>>, %arg6: memref<16x1xf32, #tpu.memory_space<vmem>>, %arg7: memref<16x16xf32, #tpu.memory_space<vmem>>, %arg8: memref<16x1xf32, #tpu.memory_space<vmem>>, %arg9: memref<1x16x128xf32, #tpu.memory_space<vmem>>) attributes {dimension_semantics = [#tpu.dimension_semantics<parallel>, #tpu.dimension_semantics<parallel>], iteration_bounds = array<i64: 6, 1>, scalar_prefetch = 0 : i64, scratch_operands = 0 : i64, tpu.core_type = #tpu.core_type<tc>, window_params = [{transform_indices = @transform_0, window_bounds = array<i64: 1, 1, 16, 136>}, {transform_indices = @transform_1, window_bounds = array<i64: 1, 16, 128>}, {pipeline_mode = #tpu.pipeline_mode<synchronous>, transform_indices = @transform_2, window_bounds = array<i64: 16, 144>}, {pipeline_mode = #tpu.pipeline_mode<synchronous>, transform_indices = @transform_3, window_bounds = array<i64: 16, 1>}, {pipeline_mode = #tpu.pipeline_mode<synchronous>, transform_indices = @transform_4, window_bounds = array<i64: 16, 1>}, {pipeline_mode = #tpu.pipeline_mode<synchronous>, transform_indices = @transform_5, window_bounds = array<i64: 16, 16>}, {pipeline_mode = #tpu.pipeline_mode<synchronous>, transform_indices = @transform_6, window_bounds = array<i64: 16, 1>}, {transform_indices = @transform_7, window_bounds = array<i64: 1, 16, 128>}]} {
    %c0 = arith.constant 0 : index
    %c0_0 = arith.constant 0 : index
    %c0_1 = arith.constant 0 : index
    %c0_2 = arith.constant 0 : index
    %0 = vector.load %arg2[%c0, %c0_0, %c0_1, %c0_2] : memref<1x1x16x136xf32, #tpu.memory_space<vmem>>, vector<1x1x16x128xf32>
    %1 = vector.shape_cast %0 : vector<1x1x16x128xf32> to vector<16x128xf32>
    %c0_3 = arith.constant 0 : index
    %c0_4 = arith.constant 0 : index
    %c0_5 = arith.constant 0 : index
    %c1 = arith.constant 1 : index
    %2 = vector.load %arg2[%c0_3, %c0_4, %c0_5, %c1] : memref<1x1x16x136xf32, #tpu.memory_space<vmem>>, vector<1x1x16x128xf32>
    %3 = vector.shape_cast %2 : vector<1x1x16x128xf32> to vector<16x128xf32>
    %c0_6 = arith.constant 0 : index
    %c0_7 = arith.constant 0 : index
    %c0_8 = arith.constant 0 : index
    %c2 = arith.constant 2 : index
    %4 = vector.load %arg2[%c0_6, %c0_7, %c0_8, %c2] : memref<1x1x16x136xf32, #tpu.memory_space<vmem>>, vector<1x1x16x128xf32>
    %5 = vector.shape_cast %4 : vector<1x1x16x128xf32> to vector<16x128xf32>
    %c0_9 = arith.constant 0 : index
    %c0_10 = arith.constant 0 : index
    %c0_11 = arith.constant 0 : index
    %c3 = arith.constant 3 : index
    %6 = vector.load %arg2[%c0_9, %c0_10, %c0_11, %c3] : memref<1x1x16x136xf32, #tpu.memory_space<vmem>>, vector<1x1x16x128xf32>
    %7 = vector.shape_cast %6 : vector<1x1x16x128xf32> to vector<16x128xf32>
    %c0_12 = arith.constant 0 : index
    %c0_13 = arith.constant 0 : index
    %c0_14 = arith.constant 0 : index
    %c4 = arith.constant 4 : index
    %8 = vector.load %arg2[%c0_12, %c0_13, %c0_14, %c4] : memref<1x1x16x136xf32, #tpu.memory_space<vmem>>, vector<1x1x16x128xf32>
    %9 = vector.shape_cast %8 : vector<1x1x16x128xf32> to vector<16x128xf32>
    %c0_15 = arith.constant 0 : index
    %c0_16 = arith.constant 0 : index
    %c0_17 = arith.constant 0 : index
    %c5 = arith.constant 5 : index
    %10 = vector.load %arg2[%c0_15, %c0_16, %c0_17, %c5] : memref<1x1x16x136xf32, #tpu.memory_space<vmem>>, vector<1x1x16x128xf32>
    %11 = vector.shape_cast %10 : vector<1x1x16x128xf32> to vector<16x128xf32>
    %c0_18 = arith.constant 0 : index
    %c0_19 = arith.constant 0 : index
    %c0_20 = arith.constant 0 : index
    %c6 = arith.constant 6 : index
    %12 = vector.load %arg2[%c0_18, %c0_19, %c0_20, %c6] : memref<1x1x16x136xf32, #tpu.memory_space<vmem>>, vector<1x1x16x128xf32>
    %13 = vector.shape_cast %12 : vector<1x1x16x128xf32> to vector<16x128xf32>
    %c0_21 = arith.constant 0 : index
    %c0_22 = arith.constant 0 : index
    %c0_23 = arith.constant 0 : index
    %c7 = arith.constant 7 : index
    %14 = vector.load %arg2[%c0_21, %c0_22, %c0_23, %c7] : memref<1x1x16x136xf32, #tpu.memory_space<vmem>>, vector<1x1x16x128xf32>
    %15 = vector.shape_cast %14 : vector<1x1x16x128xf32> to vector<16x128xf32>
    %c0_24 = arith.constant 0 : index
    %c0_25 = arith.constant 0 : index
    %c0_26 = arith.constant 0 : index
    %c8 = arith.constant 8 : index
    %16 = vector.load %arg2[%c0_24, %c0_25, %c0_26, %c8] : memref<1x1x16x136xf32, #tpu.memory_space<vmem>>, vector<1x1x16x128xf32>
    %17 = vector.shape_cast %16 : vector<1x1x16x128xf32> to vector<16x128xf32>
    %18 = tpu.concatenate %1, %3, %5, %7, %9, %11, %13, %15, %17 in 0 : vector<16x128xf32>, vector<16x128xf32>, vector<16x128xf32>, vector<16x128xf32>, vector<16x128xf32>, vector<16x128xf32>, vector<16x128xf32>, vector<16x128xf32>, vector<16x128xf32> -> vector<144x128xf32>
    %c0_27 = arith.constant 0 : index
    %c0_28 = arith.constant 0 : index
    %19 = vector.load %arg4[%c0_27, %c0_28] : memref<16x144xf32, #tpu.memory_space<vmem>>, vector<16x144xf32>
    %cst = arith.constant dense<0.000000e+00> : vector<16x128xf32>
    %20 = tpu.matmul %19, %18, %cst {dimension_numbers = #tpu.dot_dimension_numbers<[1], [0], [0], [1], [0, 0, 1, 1], [], []>} : vector<16x144xf32>, vector<144x128xf32>, vector<16x128xf32> -> vector<16x128xf32>
    %c0_29 = arith.constant 0 : index
    %c0_30 = arith.constant 0 : index
    %21 = vector.load %arg5[%c0_29, %c0_30] : memref<16x1xf32, #tpu.memory_space<vmem>>, vector<16x1xf32>
    %22 = vector.broadcast %21 : vector<16x1xf32> to vector<16x128xf32>
    %23 = arith.mulf %20, %22 : vector<16x128xf32>
    %c0_31 = arith.constant 0 : index
    %c0_32 = arith.constant 0 : index
    %24 = vector.load %arg6[%c0_31, %c0_32] : memref<16x1xf32, #tpu.memory_space<vmem>>, vector<16x1xf32>
    %25 = vector.broadcast %24 : vector<16x1xf32> to vector<16x128xf32>
    %26 = arith.addf %23, %25 : vector<16x128xf32>
    %cst_33 = arith.constant 0.000000e+00 : f32
    %27 = vector.broadcast %cst_33 : f32 to vector<16x128xf32>
    %28 = arith.cmpf oge, %26, %27 : vector<16x128xf32>
    %cst_34 = arith.constant 0.00999999977 : f32
    %29 = vector.broadcast %cst_34 : f32 to vector<16x128xf32>
    %30 = arith.mulf %29, %26 : vector<16x128xf32>
    %31 = arith.select %28, %26, %30 : vector<16x128xi1>, vector<16x128xf32>
    %c0_35 = arith.constant 0 : index
    %c0_36 = arith.constant 0 : index
    %32 = vector.load %arg7[%c0_35, %c0_36] : memref<16x16xf32, #tpu.memory_space<vmem>>, vector<16x16xf32>
    %c0_37 = arith.constant 0 : index
    %c0_38 = arith.constant 0 : index
    %c0_39 = arith.constant 0 : index
    %33 = vector.load %arg3[%c0_37, %c0_38, %c0_39] : memref<1x16x128xf32, #tpu.memory_space<vmem>>, vector<1x16x128xf32>
    %34 = vector.shape_cast %33 : vector<1x16x128xf32> to vector<16x128xf32>
    %cst_40 = arith.constant dense<0.000000e+00> : vector<16x128xf32>
    %35 = tpu.matmul %32, %34, %cst_40 {dimension_numbers = #tpu.dot_dimension_numbers<[1], [0], [0], [1], [0, 0, 1, 1], [], []>} : vector<16x16xf32>, vector<16x128xf32>, vector<16x128xf32> -> vector<16x128xf32>
    %c0_41 = arith.constant 0 : index
    %c0_42 = arith.constant 0 : index
    %36 = vector.load %arg8[%c0_41, %c0_42] : memref<16x1xf32, #tpu.memory_space<vmem>>, vector<16x1xf32>
    %37 = vector.broadcast %36 : vector<16x1xf32> to vector<16x128xf32>
    %38 = arith.addf %35, %37 : vector<16x128xf32>
    %39 = arith.addf %31, %38 : vector<16x128xf32>
    %c0_43 = arith.constant 0 : index
    %c0_44 = arith.constant 0 : index
    %c0_45 = arith.constant 0 : index
    %40 = vector.load %arg9[%c0_43, %c0_44, %c0_45] : memref<1x16x128xf32, #tpu.memory_space<vmem>>, vector<1x16x128xf32>
    %41 = vector.shape_cast %40 : vector<1x16x128xf32> to vector<16x128xf32>
    %42 = vector.shape_cast %39 : vector<16x128xf32> to vector<1x16x128xf32>
    tpu.vector_store %arg9[%c0_43, %c0_44, %c0_45], %42 {strides = array<i32>} : memref<1x16x128xf32, #tpu.memory_space<vmem>>, vector<1x16x128xf32>,
    return
  }
  func.func @transform_0(%arg0: i32, %arg1: i32) -> (i32, i32, i32, i32) {
    %c0_i32 = arith.constant 0 : i32
    %c0_i32_0 = arith.constant 0 : i32
    %c0_i32_1 = arith.constant 0 : i32
    return %arg0, %arg1, %c0_i32, %c0_i32_0 : i32, i32, i32, i32
  }
  func.func @transform_1(%arg0: i32, %arg1: i32) -> (i32, i32, i32) {
    %c0_i32 = arith.constant 0 : i32
    %c0_i32_0 = arith.constant 0 : i32
    return %arg0, %c0_i32, %arg1 : i32, i32, i32
  }
  func.func @transform_2(%arg0: i32, %arg1: i32) -> (i32, i32) {
    %c0_i32 = arith.constant 0 : i32
    %c0_i32_0 = arith.constant 0 : i32
    %c0_i32_1 = arith.constant 0 : i32
    return %c0_i32, %c0_i32_0 : i32, i32
  }
  func.func @transform_3(%arg0: i32, %arg1: i32) -> (i32, i32) {
    %c0_i32 = arith.constant 0 : i32
    %c0_i32_0 = arith.constant 0 : i32
    %c0_i32_1 = arith.constant 0 : i32
    return %c0_i32, %c0_i32_0 : i32, i32
  }
  func.func @transform_4(%arg0: i32, %arg1: i32) -> (i32, i32) {
    %c0_i32 = arith.constant 0 : i32
    %c0_i32_0 = arith.constant 0 : i32
    %c0_i32_1 = arith.constant 0 : i32
    return %c0_i32, %c0_i32_0 : i32, i32
  }
  func.func @transform_5(%arg0: i32, %arg1: i32) -> (i32, i32) {
    %c0_i32 = arith.constant 0 : i32
    %c0_i32_0 = arith.constant 0 : i32
    %c0_i32_1 = arith.constant 0 : i32
    return %c0_i32, %c0_i32_0 : i32, i32
  }
  func.func @transform_6(%arg0: i32, %arg1: i32) -> (i32, i32) {
    %c0_i32 = arith.constant 0 : i32
    %c0_i32_0 = arith.constant 0 : i32
    %c0_i32_1 = arith.constant 0 : i32
    return %c0_i32, %c0_i32_0 : i32, i32
  }
  func.func @transform_7(%arg0: i32, %arg1: i32) -> (i32, i32, i32) {
    %c0_i32 = arith.constant 0 : i32
    %c0_i32_0 = arith.constant 0 : i32
    return %arg0, %c0_i32, %arg1 : i32, i32, i32
  }
}

</mosaic_0001>

<bundles_post_ra>
// kernel: my_residual_block_2d.3
= control target key start
LH: loop header
LB: loop body
LE: loop exit
PB: predicated region body
PF: predicated region fallthrough
CT: control target
= control target key end

     0   :  { %s925_s24 = smov 0   ;;  %s927_s25 = smov 0   ;;  %s1043_s0 = inlined_call_operand.vmem [shape: f32[6,1,16,136], index: 0, kind: input, shape index: {}]   ;;  %s1044_s1 = inlined_call_operand.vmem [shape: f32[6,16,128], index: 1, kind: input, shape index: {}]   ;;  %s1045_s2 = inlined_call_operand.vmem [shape: f32[16,144], index: 2, kind: input, shape index: {}]   ;;  %s1046_s3 = inlined_call_operand.vmem [shape: f32[16,1], index: 3, kind: input, shape index: {}]   ;;  %s1047_s4 = inlined_call_operand.vmem [shape: f32[16,1], index: 4, kind: input, shape index: {}]   ;;  %s1048_s5 = inlined_call_operand.vmem [shape: f32[16,16], index: 5, kind: input, shape index: {}]   ;;  %s1049_s6 = inlined_call_operand.vmem [shape: f32[16,1], index: 6, kind: input, shape index: {}]   ;;  %s1050_s7 = inlined_call_operand.vmem [shape: f32[6,16,128], index: 7, kind: output, shape index: {}]  }
   0x1   :  { %s929_s26 = smov 0  }
   0x2 LB: > { %s29_s27 = sadd.s32 1, %s870_s25  ;;  %p704_p0 = scmp.ge.s32.totalorder %s874_s26, 1  ;;  %s874_s26 = sphi %s929_s26, %s17_s26   ;;  %s870_s25 = sphi %s927_s25, %s1052_s25   ;;  %s866_s24 = sphi %s925_s24, %s1051_s24  }
   0x3   : > { %p31_p1 = scmp.ge.s32.totalorder %s29_s27, 6  ;;  %p272_p2 = scmp.lt.s32.totalorder %s874_s26, 7 }
   0x5   : > { %s1054_s27 = smov (%p31_p1, %s29_s27), 0  ;;  %p273_p3 = pnand %p704_p0, %p272_p2 }
   0x6   : > { %p319_p4 = scmp.lt.s32.totalorder (!%p273_p3), %s866_s24, 5  ;;  %s876_s9 = smov (!%p273_p3), 121  }
   0x7   : > { %276 = sbr.rel (%p273_p3) target bundleno = 323 (0x143), region = 48  ;;  %s877_s10 = smov (!%p273_p3), 122  }
   0x8   : > { %s878_s11 = smov (!%p273_p3), 123   ;;  %s879_s12 = smov (!%p273_p3), 124  }
   0x9   : > { %s880_s13 = smov (!%p273_p3), 125   ;;  %s881_s14 = smov (!%p273_p3), 126  }
   0xa   : > { %s882_s15 = smov (!%p273_p3), 127   ;;  %s883_s16 = smov (!%p273_p3), 120  }
   0xc   : > { %s1056_s24 = smov (!%p319_p4, %s866_s24), 5  ;;  %vm460_vm0 = vcmask 130048   ;;  %v547_v11 = vld [vmem:[%s1048_s5] sm:$0xff]  ;;  %vm438_vm1 = vcmask 990208   ;;  %v548_v18 = vld [vmem:[%s1048_s5 + $0x8] sm:$0xff]  ;;  %v884_v20 = vmov 0  }
   0xd   : > { %s717_s28 = sshll.u32 %s1056_s24, 5  ;;  %s718_s17 = sshll.u32 %s1056_s24, 4  ;;  %v513_v19 = vld [vmem:[%s1046_s3] sm:$0xff]  ;;  %849 = vset.pattern.permute.xlu1 %v884_v20  ;;  %851 = vset.pattern.permute.xlu0 %v884_v20  ;;  %vm425_vm2 = vcmask 998400   ;;  %vm451_vm3 = vcmask 982016   ;;  %vm412_vm4 = vcmask 1006592  }
   0xe   : > { %s327_s8 = scalar_lea.vmem %s1043_s0, %s717_s28  ;;  %s335_s20 = scalar_lea.vmem %s1044_s1, %s718_s17  ;;  %850 = vset.pattern.permute.xlu2 %v884_v20  ;;  %v528_v38 = vld [vmem:[%s1047_s4 + $0x8] sm:$0xff]  ;;  %vm399_vm5 = vcmask 1014784   ;;  %vm386_vm6 = vcmask 1022976   ;;  %v527_v54 = vld [vmem:[%s1047_s4] sm:$0xff]  ;;  %vm373_vm7 = vcmask 1031168   ;;  %vm360_vm8 = vcmask 1039360  }
   0xf   : > { %v949_v0 = vld [vmem:[%s327_s8 + $0x10] sm:$0xff]  ;;  %v347_v1 = vld [vmem:[%s327_s8 + $0x18] sm:$0xff]  ;;  %v952_v3 = vld [vmem:[%s327_s8] sm:$0xff] }
  0x10   : > { %v769_v2 = vpack.i.bf16 %v347_v1, %v949_v0  ;;  %v346_v4 = vld [vmem:[%s327_s8 + $0x8] sm:$0xff]  ;;  %v549_v10 = vld [vmem:[%s335_s20] sm:$0xff] }
  0x11   : > { %v774_v5 = vpack.i.bf16 %v346_v4, %v952_v3  ;;  %v550_v9 = vld [vmem:[%s335_s20 + $0x8] sm:$0xff] }
  0x12   : > { %770 = vrot.lane.b32.xlu0 %v769_v2, %s876_s9  ;;  %780 = vrot.lane.b32.xlu1 %v769_v2, %s877_s10  ;;  %v552_v53 = vld [vmem:[%s1049_s6 + $0x8] sm:$0xff] }
  0x13   : > { %790 = vrot.lane.b32.xlu2 %v769_v2, %s878_s11  ;;  %583 = vmatpush.msra.mxu2 %v550_v9  ;;  %v514_v55 = vld [vmem:[%s1046_s3 + $0x8] sm:$0xff] }
  0x14   : > { %v457_v20 = vld [vmem:[%s1045_s2 + $0x8] sm:$0xff] }
  0x15   : > { %584 = vmatpush.msra.mxu2 %v549_v10 }
  0x16   : > { %713 = vmatmul.msk.f32.vlgmr.msra.gmra.mxu2 %vm460_vm0, %v547_v11 }
  0x1a   : > { %775 = vrot.lane.b32.xlu0 %v774_v5, %s876_s9  ;;  %785 = vrot.lane.b32.xlu1 %v774_v5, %s877_s10  ;;  %s343_s10 = scalar_lea.vmem %s1050_s7, %s718_s17 }
  0x1b   : > { %795 = vrot.lane.b32.xlu2 %v774_v5, %s878_s11 }
  0x1e   : > { %714 = vmatmul.msk.f32.gmra.mxu2 %vm460_vm0, %v548_v18 }
  0x22   : > { %800 = vrot.lane.b32.xlu0 %v769_v2, %s879_s12  ;;  %805 = vrot.lane.b32.xlu1 %v774_v5, %s879_s12 }
  0x23   : > { %810 = vrot.lane.b32.xlu2 %v769_v2, %s880_s13 }
  0x2a   : > { %815 = vrot.lane.b32.xlu0 %v774_v5, %s880_s13  ;;  %820 = vrot.lane.b32.xlu1 %v769_v2, %s881_s14 }
  0x2b   : > { %825 = vrot.lane.b32.xlu2 %v774_v5, %s881_s14 }
  0x32   : > { %830 = vrot.lane.b32.xlu0 %v769_v2, %s882_s15  ;;  %835 = vrot.lane.b32.xlu1 %v774_v5, %s882_s15 }
  0x33   : > { %840 = vrot.lane.b32.xlu2 %v769_v2, %s883_s16 }
  0x3a   : > { %845 = vrot.lane.b32.xlu0 %v774_v5, %s883_s16  ;;  %517 = vperm.xlu1 %849, %v513_v19  }
  0x3b   : > { %522 = vperm.xlu2 %850, %v514_v55  }
  0x42   : > { %536 = vperm.xlu1 %849, %v528_v38   ;;  %531 = vperm.xlu0 %851, %v527_v54  }
  0x4a   : > { %560 = vperm.xlu1 %849, %v552_v53  }
  0x6d   : > { %v955_v6 = vpop.permute.xlu2 %790 }
  0x6e   : > { %v793_v33 = vunpack.i.h.bf16 %v955_v6  ;;  %v792_v34 = vunpack.i.l.bf16 %v955_v6  ;;  %v551_v6 = vld [vmem:[%s1049_s6] sm:$0xff] }
  0x6f   : > { %555 = vperm.xlu2 %850, %v551_v6  }
  0x70   : > { %v414_v42 = vsel %vm412_vm4, %v792_v34, %v793_v33 }
  0x75   : > { %v957_v7 = vpop.permute.xlu2 %795 }
  0x76   : > { %v798_v39 = vunpack.i.h.bf16 %v957_v7  ;;  %v797_v40 = vunpack.i.l.bf16 %v957_v7 }
  0x78   : > { %v413_v48 = vsel %vm412_vm4, %v797_v40, %v798_v39 }
  0x7d   : > { %v965_v8 = vpop.permute.xlu2 %810 }
  0x7e   : > { %v813_v49 = vunpack.i.h.bf16 %v965_v8  ;;  %v812_v50 = vunpack.i.l.bf16 %v965_v8 }
  0x80   : > { %v388_v56 = vsel %vm386_vm6, %v812_v50, %v813_v49 }
  0x84   : > { %v771_v12 = vpop.permute.xlu0 %770  ;;  %v781_v13 = vpop.permute.xlu1 %780 }
  0x85   : > { %v773_v14 = vunpack.i.h.bf16 %v771_v12  ;;  %v772_v15 = vunpack.i.l.bf16 %v771_v12  ;;  %v971_v16 = vpop.permute.xlu2 %825  ;;  %v783_v21 = vunpack.i.h.bf16 %v781_v13  ;;  %v782_v22 = vunpack.i.l.bf16 %v781_v13 }
  0x86   : > { %v828_v59 = vunpack.i.h.bf16 %v971_v16  ;;  %v827_v60 = vunpack.i.l.bf16 %v971_v16  ;;  %v456_v16 = vld [vmem:[%s1045_s2] sm:$0xff] }
  0x87   : > { %v440_v17 = vsel %vm438_vm1, %v772_v15, %v773_v14  ;;  %v427_v35 = vsel %vm425_vm2, %v782_v22, %v783_v21  ;;  %v459_v21 = vld [vmem:[%s1045_s2 + $0x18] sm:$0xff] }
  0x88   : > { %467 = vmatpush.msra.mxu0 %v440_v17  ;;  %720 = vmatpush.msra.mxu3 %v440_v17  ;;  %v374_v5 = vsel %vm373_vm7, %v827_v60, %v828_v59  ;;  %v458_v17 = vld [vmem:[%s1045_s2 + $0x10] sm:$0xff] }
  0x8c   : > { %v776_v23 = vpop.permute.xlu0 %775  ;;  %v786_v24 = vpop.permute.xlu1 %785 }
  0x8d   : > { %v778_v25 = vunpack.i.h.bf16 %v776_v23  ;;  %v777_v26 = vunpack.i.l.bf16 %v776_v23  ;;  %v788_v27 = vunpack.i.h.bf16 %v786_v24  ;;  %v787_v28 = vunpack.i.l.bf16 %v786_v24  ;;  %v841_v29 = vpop.permute.xlu2 %840 }
  0x8e   : > { %v843_v31 = vunpack.i.h.bf16 %v841_v29  ;;  %v842_v32 = vunpack.i.l.bf16 %v841_v29 }
  0x8f   : > { %v439_v30 = vsel %vm438_vm1, %v777_v26, %v778_v25  ;;  %v426_v36 = vsel %vm425_vm2, %v787_v28, %v788_v27 }
  0x90   : > { %468 = vmatpush.msra.mxu0 %v439_v30  ;;  %721 = vmatpush.msra.mxu3 %v439_v30  ;;  %v453_v37 = vsel %vm451_vm3, %v842_v32, %v843_v31 }
  0x91   : > { %504 = vmatpush.msra.mxu1 %v453_v37 }
  0x92   : > { %469 = vmatpush.msra.mxu0 %v427_v35  ;;  %722 = vmatpush.msra.mxu3 %v427_v35 }
  0x94   : > { %v801_v41 = vpop.permute.xlu0 %800  ;;  %470 = vmatpush.msra.mxu0 %v426_v36  ;;  %723 = vmatpush.msra.mxu3 %v426_v36  ;;  %v806_v43 = vpop.permute.xlu1 %805 }
  0x95   : > { %v803_v44 = vunpack.i.h.bf16 %v801_v41  ;;  %v802_v45 = vunpack.i.l.bf16 %v801_v41  ;;  %v808_v46 = vunpack.i.h.bf16 %v806_v43  ;;  %v807_v47 = vunpack.i.l.bf16 %v806_v43  ;;  %v523_v23 = vpop.permute.xlu2 %522 }
  0x96   : > { %471 = vmatpush.msra.mxu0 %v414_v42  ;;  %724 = vmatpush.msra.mxu3 %v414_v42 }
  0x97   : > { %v401_v51 = vsel %vm399_vm5, %v802_v45, %v803_v44  ;;  %v400_v52 = vsel %vm399_vm5, %v807_v47, %v808_v46 }
  0x98   : > { %472 = vmatpush.msra.mxu0 %v413_v48  ;;  %725 = vmatpush.msra.mxu3 %v413_v48 }
  0x9a   : > { %473 = vmatpush.msra.mxu0 %v401_v51  ;;  %726 = vmatpush.msra.mxu3 %v401_v51 }
  0x9c   : > { %v816_v57 = vpop.permute.xlu0 %815  ;;  %474 = vmatpush.msra.mxu0 %v400_v52  ;;  %727 = vmatpush.msra.mxu3 %v400_v52  ;;  %v821_v58 = vpop.permute.xlu1 %820 }
  0x9d   : > { %v818_v61 = vunpack.i.h.bf16 %v816_v57  ;;  %v817_v62 = vunpack.i.l.bf16 %v816_v57  ;;  %v823_v63 = vunpack.i.h.bf16 %v821_v58  ;;  %v822_v1 = vunpack.i.l.bf16 %v821_v58 }
  0x9e   : > { %475 = vmatpush.msra.mxu0 %v388_v56  ;;  %728 = vmatpush.msra.mxu3 %v388_v56 }
  0x9f   : > { %v387_v2 = vsel %vm386_vm6, %v817_v62, %v818_v61  ;;  %v375_v4 = vsel %vm373_vm7, %v822_v1, %v823_v63 }
  0xa0   : > { %476 = vmatpush.msra.mxu0 %v387_v2  ;;  %729 = vmatpush.msra.mxu3 %v387_v2 }
  0xa2   : > { %477 = vmatpush.msra.mxu0 %v375_v4  ;;  %730 = vmatpush.msra.mxu3 %v375_v4 }
  0xa4   : > { %v831_v7 = vpop.permute.xlu0 %830  ;;  %478 = vmatpush.msra.mxu0 %v374_v5  ;;  %731 = vmatpush.msra.mxu3 %v374_v5  ;;  %v836_v8 = vpop.permute.xlu1 %835 }
  0xa5   : > { %v833_v9 = vunpack.i.h.bf16 %v831_v7  ;;  %v832_v10 = vunpack.i.l.bf16 %v831_v7  ;;  %v838_v11 = vunpack.i.h.bf16 %v836_v8  ;;  %v837_v12 = vunpack.i.l.bf16 %v836_v8 }
  0xa7   : > { %v362_v13 = vsel %vm360_vm8, %v832_v10, %v833_v9  ;;  %v361_v14 = vsel %vm360_vm8, %v837_v12, %v838_v11 }
  0xa8   : > { %479 = vmatpush.msra.mxu0 %v362_v13  ;;  %732 = vmatpush.msra.mxu3 %v362_v13 }
  0xaa   : > { %480 = vmatpush.msra.mxu0 %v361_v14  ;;  %733 = vmatpush.msra.mxu3 %v361_v14 }
  0xac   : > { %v846_v15 = vpop.permute.xlu0 %845  ;;  %481 = vmatpush.msra.mxu0 %v949_v0  ;;  %734 = vmatpush.msra.mxu3 %v949_v0  ;;  %v518_v22 = vpop.permute.xlu1 %517 }
  0xad   : > { %v848_v18 = vunpack.i.h.bf16 %v846_v15  ;;  %v847_v19 = vunpack.i.l.bf16 %v846_v15 }
  0xae   : > { %482 = vmatpush.msra.mxu0 %v952_v3  ;;  %735 = vmatpush.msra.mxu3 %v952_v3  ;;  %v586_v3 = vpop.f32.mrf.mxu2 }
  0xaf   : > { %v452_v0 = vsel %vm451_vm3, %v847_v19, %v848_v18  ;;  %483 = vmatmul.f32.vlgmr.msra.gmra.mxu0 %v456_v16  ;;  %486 = vmatmul.f32.vlgmr.msra.gmra.mxu3 %v458_v17 }
  0xb0   : > { %505 = vmatpush.msra.mxu1 %v452_v0 }
  0xb1   : > { %711 = vmatmul.msk.f32.vlgmr.msra.gmra.mxu1 %vm460_vm0, %v457_v20 }
  0xb4   : > { %v532_v27 = vpop.permute.xlu0 %531  ;;  %v537_v28 = vpop.permute.xlu1 %536 }
  0xb6   : > { %v589_v40 = vpop.f32.mrf.mxu2 }
  0xb9   : > { %712 = vmatmul.msk.f32.gmra.mxu1 %vm460_vm0, %v459_v21 }
  0xbc   : > { %v561_v41 = vpop.permute.xlu1 %560 }
  0xbd   : > { %v590_v44 = vadd.f32 %v589_v40, %v561_v41 }
  0xc9   : > { %v556_v30 = vpop.permute.xlu2 %555 }
  0xca   : > { %v587_v32 = vadd.f32 %v586_v3, %v556_v30 }
 0x12c   : > { %v484_v24 = vpop.f32.mrf.mxu0 }
 0x12e   : > { %v507_v25 = vpop.f32.mrf.mxu1 }
 0x12f   : > { %v508_v26 = vadd.f32 %v507_v25, %v484_v24 }
 0x131   : > { %v525_v29 = vmul.f32 %v518_v22, %v508_v26 }
 0x132   : > { %v487_v33 = vpop.f32.mrf.mxu3 }
 0x133   : > { %v539_v31 = vadd.f32 %v532_v27, %v525_v29 }
 0x135   : > { %vm541_vm9 = vcmp.ge.f32.partialorder %v539_v31, 0.0  ;;  %v543_v34 = vmul.f32 0.01, %v539_v31 }
 0x136   : > { %v510_v35 = vpop.f32.mrf.mxu1 }
 0x137   : > { %v545_v36 = vsel %vm541_vm9, %v539_v31, %v543_v34  ;;  %v511_v37 = vadd.f32 %v510_v35, %v487_v33 }
 0x138   : > { %v592_v38 = vadd.f32 %v587_v32, %v545_v36 }
 0x139   : > { %v526_v39 = vmul.f32 %v523_v23, %v511_v37 }
 0x13a   : > { %594 = vst [vmem:[%s343_s10] sm:$0xff] %v592_v38 }
 0x13b   : > { %v540_v42 = vadd.f32 %v537_v28, %v526_v39 }
 0x13d   : > { %vm542_vm10 = vcmp.ge.f32.partialorder %v540_v42, 0.0  ;;  %v544_v43 = vmul.f32 0.01, %v540_v42 }
 0x13f   : > { %v546_v45 = vsel %vm542_vm10, %v540_v42, %v544_v43 }
 0x140   : > { %v593_v46 = vadd.f32 %v590_v44, %v546_v45 }
 0x142   : > { %595 = vst [vmem:[%s343_s10 + $0x8] sm:$0xff] %v593_v46 }
 0x143 PF: > { %s17_s26 = sadd.s32 1, %s874_s26   ;;  %s1051_s24 = smov %s870_s25 }
 0x144   : > { %p14_p5 = scmp.ge.s32.totalorder %s17_s26, 8   ;;  %s1052_s25 = smov %s1054_s27 }
 0x146   :  { %16 = sbr.rel (!%p14_p5) target bundleno = 2 (0x2), region = 81 }

// kernel: my_residual_block_2d.2
= control target key start
LH: loop header
LB: loop body
LE: loop exit
PB: predicated region body
PF: predicated region fallthrough
CT: control target
= control target key end

     0   :  { %s736_s15 = smov 0   ;;  %s738_s16 = smov 0   ;;  %s825_s0 = inlined_call_operand.vmem [shape: f32[6,1,16,136], index: 0, kind: input, shape index: {}]   ;;  %s826_s1 = inlined_call_operand.vmem [shape: f32[16,144], index: 1, kind: input, shape index: {}]   ;;  %s827_s2 = inlined_call_operand.vmem [shape: f32[16,1], index: 2, kind: input, shape index: {}]   ;;  %s828_s3 = inlined_call_operand.vmem [shape: f32[16,1], index: 3, kind: input, shape index: {}]   ;;  %s829_s4 = inlined_call_operand.vmem [shape: f32[6,16,128], index: 4, kind: output, shape index: {}]  }
   0x1   :  { %s740_s17 = smov 0  }
   0x2 LB: > { %s26_s18 = sadd.s32 1, %s696_s16  ;;  %p535_p0 = scmp.ge.s32.totalorder %s700_s17, 1  ;;  %s700_s17 = sphi %s740_s17, %s14_s17   ;;  %s696_s16 = sphi %s738_s16, %s831_s16   ;;  %s692_s15 = sphi %s736_s15, %s830_s15  }
   0x3   : > { %p28_p1 = scmp.ge.s32.totalorder %s26_s18, 6  ;;  %p182_p2 = scmp.lt.s32.totalorder %s700_s17, 7 }
   0x5   : > { %s833_s18 = smov (%p28_p1, %s26_s18), 0  ;;  %p183_p3 = pnand %p535_p0, %p182_p2 }
   0x6   : > { %p215_p4 = scmp.lt.s32.totalorder (!%p183_p3), %s692_s15, 5  ;;  %s702_s23 = smov (!%p183_p3), 121  }
   0x7   : > { %186 = sbr.rel (%p183_p3) target bundleno = 322 (0x142), region = 36  ;;  %s703_s24 = smov (!%p183_p3), 122  }
   0x8   : > { %s704_s25 = smov (!%p183_p3), 123   ;;  %s705_s26 = smov (!%p183_p3), 124  }
   0x9   : > { %s706_s27 = smov (!%p183_p3), 125   ;;  %s707_s28 = smov (!%p183_p3), 126  }
   0xa   : > { %s708_s29 = smov (!%p183_p3), 127   ;;  %s709_s30 = smov (!%p183_p3), 120  }
   0xc   : > { %s835_s15 = smov (!%p215_p4, %s692_s15), 5  ;;  %vm326_vm0 = vcmask 990208   ;;  %vm313_vm1 = vcmask 998400   ;;  %vm339_vm2 = vcmask 982016   ;;  %vm300_vm3 = vcmask 1006592   ;;  %v401_v32 = vld [vmem:[%s827_s2] sm:$0xff] }
   0xd   : > { %s544_s19 = sshll.u32 %s835_s15, 5  ;;  %v710_v35 = vmov 0   ;;  %vm287_vm4 = vcmask 1014784   ;;  %vm274_vm5 = vcmask 1022976   ;;  %v415_v48 = vld [vmem:[%s828_s3] sm:$0xff]  ;;  %v402_v49 = vld [vmem:[%s827_s2 + $0x8] sm:$0xff] }
   0xe   : > { %s223_s22 = scalar_lea.vmem %s825_s0, %s544_s19  ;;  %675 = vset.pattern.permute.xlu1 %v710_v35  ;;  %677 = vset.pattern.permute.xlu0 %v710_v35  ;;  %v416_v50 = vld [vmem:[%s828_s3 + $0x8] sm:$0xff]  ;;  %vm261_vm6 = vcmask 1031168   ;;  %vm248_vm7 = vcmask 1039360   ;;  %vm348_vm8 = vcmask 130048  }
   0xf   : > { %v760_v0 = vld [vmem:[%s223_s22 + $0x10] sm:$0xff]  ;;  %v235_v1 = vld [vmem:[%s223_s22 + $0x18] sm:$0xff]  ;;  %v763_v3 = vld [vmem:[%s223_s22] sm:$0xff]  ;;  %676 = vset.pattern.permute.xlu2 %v710_v35 }
  0x10   : > { %v595_v2 = vpack.i.bf16 %v235_v1, %v760_v0  ;;  %v234_v4 = vld [vmem:[%s223_s22 + $0x8] sm:$0xff] }
  0x11   : > { %v600_v5 = vpack.i.bf16 %v234_v4, %v763_v3 }
  0x12   : > { %596 = vrot.lane.b32.xlu0 %v595_v2, %s702_s23  ;;  %606 = vrot.lane.b32.xlu1 %v595_v2, %s703_s24 }
  0x13   : > { %616 = vrot.lane.b32.xlu2 %v595_v2, %s704_s25 }
  0x1a   : > { %601 = vrot.lane.b32.xlu0 %v600_v5, %s702_s23  ;;  %611 = vrot.lane.b32.xlu1 %v600_v5, %s703_s24 }
  0x1b   : > { %621 = vrot.lane.b32.xlu2 %v600_v5, %s704_s25  ;;  %s545_s25 = sshll.u32 %s835_s15, 4 }
  0x22   : > { %626 = vrot.lane.b32.xlu0 %v595_v2, %s705_s26  ;;  %631 = vrot.lane.b32.xlu1 %v600_v5, %s705_s26 }
  0x23   : > { %636 = vrot.lane.b32.xlu2 %v595_v2, %s706_s27 }
  0x2a   : > { %641 = vrot.lane.b32.xlu0 %v600_v5, %s706_s27  ;;  %646 = vrot.lane.b32.xlu1 %v595_v2, %s707_s28 }
  0x2b   : > { %651 = vrot.lane.b32.xlu2 %v600_v5, %s707_s28  ;;  %s231_s28 = scalar_lea.vmem %s829_s4, %s545_s25 }
  0x32   : > { %656 = vrot.lane.b32.xlu0 %v595_v2, %s708_s29  ;;  %661 = vrot.lane.b32.xlu1 %v600_v5, %s708_s29 }
  0x33   : > { %666 = vrot.lane.b32.xlu2 %v595_v2, %s709_s30 }
  0x3a   : > { %671 = vrot.lane.b32.xlu0 %v600_v5, %s709_s30  ;;  %405 = vperm.xlu1 %675, %v401_v32  }
  0x3b   : > { %410 = vperm.xlu2 %676, %v402_v49  }
  0x42   : > { %419 = vperm.xlu0 %677, %v415_v48   ;;  %424 = vperm.xlu1 %675, %v416_v50  }
  0x6d   : > { %v617_v6 = vpop.permute.xlu2 %616 }
  0x6e   : > { %v619_v27 = vunpack.i.h.bf16 %v617_v6  ;;  %v618_v28 = vunpack.i.l.bf16 %v617_v6 }
  0x70   : > { %v302_v37 = vsel %vm300_vm3, %v618_v28, %v619_v27 }
  0x75   : > { %v622_v7 = vpop.permute.xlu2 %621 }
  0x76   : > { %v624_v33 = vunpack.i.h.bf16 %v622_v7  ;;  %v623_v34 = vunpack.i.l.bf16 %v622_v7 }
  0x78   : > { %v301_v43 = vsel %vm300_vm3, %v623_v34, %v624_v33 }
  0x7d   : > { %v766_v8 = vpop.permute.xlu2 %636 }
  0x7e   : > { %v639_v44 = vunpack.i.h.bf16 %v766_v8  ;;  %v638_v45 = vunpack.i.l.bf16 %v766_v8 }
  0x80   : > { %v276_v51 = vsel %vm274_vm5, %v638_v45, %v639_v44 }
  0x84   : > { %v597_v9 = vpop.permute.xlu0 %596  ;;  %v607_v10 = vpop.permute.xlu1 %606 }
  0x85   : > { %v599_v11 = vunpack.i.h.bf16 %v597_v9  ;;  %v598_v12 = vunpack.i.l.bf16 %v597_v9  ;;  %v768_v13 = vpop.permute.xlu2 %651  ;;  %v609_v15 = vunpack.i.h.bf16 %v607_v10  ;;  %v608_v16 = vunpack.i.l.bf16 %v607_v10  ;;  %v344_v10 = vld [vmem:[%s826_s1] sm:$0xff] }
  0x86   : > { %v654_v54 = vunpack.i.h.bf16 %v768_v13  ;;  %v653_v55 = vunpack.i.l.bf16 %v768_v13 }
  0x87   : > { %v328_v14 = vsel %vm326_vm0, %v598_v12, %v599_v11  ;;  %v315_v29 = vsel %vm313_vm1, %v608_v16, %v609_v15  ;;  %v346_v11 = vld [vmem:[%s826_s1 + $0x10] sm:$0xff]  ;;  %v347_v15 = vld [vmem:[%s826_s1 + $0x18] sm:$0xff] }
  0x88   : > { %355 = vmatpush.msra.mxu0 %v328_v14  ;;  %546 = vmatpush.msra.mxu2 %v328_v14  ;;  %v262_v62 = vsel %vm261_vm6, %v653_v55, %v654_v54  ;;  %v345_v14 = vld [vmem:[%s826_s1 + $0x8] sm:$0xff] }
  0x8c   : > { %v602_v17 = vpop.permute.xlu0 %601  ;;  %v612_v18 = vpop.permute.xlu1 %611 }
  0x8d   : > { %v604_v19 = vunpack.i.h.bf16 %v602_v17  ;;  %v603_v20 = vunpack.i.l.bf16 %v602_v17  ;;  %v614_v21 = vunpack.i.h.bf16 %v612_v18  ;;  %v613_v22 = vunpack.i.l.bf16 %v612_v18  ;;  %v667_v23 = vpop.permute.xlu2 %666 }
  0x8e   : > { %v669_v25 = vunpack.i.h.bf16 %v667_v23  ;;  %v668_v26 = vunpack.i.l.bf16 %v667_v23  ;;  %v436_v17 = vlaneseq }
  0x8f   : > { %v327_v24 = vsel %vm326_vm0, %v603_v20, %v604_v19  ;;  %v314_v30 = vsel %vm313_vm1, %v613_v22, %v614_v21 }
  0x90   : > { %356 = vmatpush.msra.mxu0 %v327_v24  ;;  %547 = vmatpush.msra.mxu2 %v327_v24  ;;  %v341_v31 = vsel %vm339_vm2, %v668_v26, %v669_v25  ;;  %v437_v22 = vand.u32 127, %v436_v17 }
  0x91   : > { %392 = vmatpush.msra.mxu1 %v341_v31 }
  0x92   : > { %357 = vmatpush.msra.mxu0 %v315_v29  ;;  %548 = vmatpush.msra.mxu2 %v315_v29  ;;  %vm440_vm9 = vcmp.lt.s32.totalorder %v437_v22, 16 }
  0x94   : > { %v627_v36 = vpop.permute.xlu0 %626  ;;  %358 = vmatpush.msra.mxu0 %v314_v30  ;;  %549 = vmatpush.msra.mxu2 %v314_v30  ;;  %v632_v38 = vpop.permute.xlu1 %631 }
  0x95   : > { %v629_v39 = vunpack.i.h.bf16 %v627_v36  ;;  %v628_v40 = vunpack.i.l.bf16 %v627_v36  ;;  %v634_v41 = vunpack.i.h.bf16 %v632_v38  ;;  %v633_v42 = vunpack.i.l.bf16 %v632_v38  ;;  %v411_v27 = vpop.permute.xlu2 %410 }
  0x96   : > { %359 = vmatpush.msra.mxu0 %v302_v37  ;;  %550 = vmatpush.msra.mxu2 %v302_v37 }
  0x97   : > { %v289_v46 = vsel %vm287_vm4, %v628_v40, %v629_v39  ;;  %v288_v47 = vsel %vm287_vm4, %v633_v42, %v634_v41 }
  0x98   : > { %360 = vmatpush.msra.mxu0 %v301_v43  ;;  %551 = vmatpush.msra.mxu2 %v301_v43 }
  0x9a   : > { %361 = vmatpush.msra.mxu0 %v289_v46  ;;  %552 = vmatpush.msra.mxu2 %v289_v46 }
  0x9c   : > { %v642_v52 = vpop.permute.xlu0 %641  ;;  %362 = vmatpush.msra.mxu0 %v288_v47  ;;  %553 = vmatpush.msra.mxu2 %v288_v47  ;;  %v647_v53 = vpop.permute.xlu1 %646 }
  0x9d   : > { %v644_v56 = vunpack.i.h.bf16 %v642_v52  ;;  %v643_v57 = vunpack.i.l.bf16 %v642_v52  ;;  %v649_v58 = vunpack.i.h.bf16 %v647_v53  ;;  %v648_v59 = vunpack.i.l.bf16 %v647_v53 }
  0x9e   : > { %363 = vmatpush.msra.mxu0 %v276_v51  ;;  %554 = vmatpush.msra.mxu2 %v276_v51 }
  0x9f   : > { %v275_v60 = vsel %vm274_vm5, %v643_v57, %v644_v56  ;;  %v263_v61 = vsel %vm261_vm6, %v648_v59, %v649_v58 }
  0xa0   : > { %364 = vmatpush.msra.mxu0 %v275_v60  ;;  %555 = vmatpush.msra.mxu2 %v275_v60 }
  0xa2   : > { %365 = vmatpush.msra.mxu0 %v263_v61  ;;  %556 = vmatpush.msra.mxu2 %v263_v61 }
  0xa4   : > { %v657_v63 = vpop.permute.xlu0 %656  ;;  %366 = vmatpush.msra.mxu0 %v262_v62  ;;  %557 = vmatpush.msra.mxu2 %v262_v62  ;;  %v662_v1 = vpop.permute.xlu1 %661 }
  0xa5   : > { %v659_v2 = vunpack.i.h.bf16 %v657_v63  ;;  %v658_v4 = vunpack.i.l.bf16 %v657_v63  ;;  %v664_v5 = vunpack.i.h.bf16 %v662_v1  ;;  %v663_v6 = vunpack.i.l.bf16 %v662_v1 }
  0xa7   : > { %v250_v7 = vsel %vm248_vm7, %v658_v4, %v659_v2  ;;  %v249_v8 = vsel %vm248_vm7, %v663_v6, %v664_v5 }
  0xa8   : > { %367 = vmatpush.msra.mxu0 %v250_v7  ;;  %558 = vmatpush.msra.mxu2 %v250_v7 }
  0xaa   : > { %368 = vmatpush.msra.mxu0 %v249_v8  ;;  %559 = vmatpush.msra.mxu2 %v249_v8 }
  0xac   : > { %v672_v9 = vpop.permute.xlu0 %671  ;;  %369 = vmatpush.msra.mxu0 %v760_v0  ;;  %560 = vmatpush.msra.mxu2 %v760_v0  ;;  %v406_v20 = vpop.permute.xlu1 %405 }
  0xad   : > { %v674_v12 = vunpack.i.h.bf16 %v672_v9  ;;  %v673_v13 = vunpack.i.l.bf16 %v672_v9 }
  0xae   : > { %370 = vmatpush.msra.mxu0 %v763_v3  ;;  %561 = vmatpush.msra.mxu2 %v763_v3 }
  0xaf   : > { %v340_v0 = vsel %vm339_vm2, %v673_v13, %v674_v12  ;;  %371 = vmatmul.f32.vlgmr.msra.gmra.mxu0 %v344_v10  ;;  %374 = vmatmul.f32.vlgmr.msra.gmra.mxu2 %v346_v11 }
  0xb0   : > { %393 = vmatpush.msra.mxu1 %v340_v0 }
  0xb1   : > { %540 = vmatmul.msk.f32.vlgmr.msra.gmra.mxu1 %vm348_vm8, %v345_v14 }
  0xb4   : > { %v420_v21 = vpop.permute.xlu0 %419  ;;  %v425_v32 = vpop.permute.xlu1 %424 }
  0xb9   : > { %541 = vmatmul.msk.f32.gmra.mxu1 %vm348_vm8, %v347_v15 }
 0x12c   : > { %v372_v16 = vpop.f32.mrf.mxu0 }
 0x12e   : > { %v395_v18 = vpop.f32.mrf.mxu1 }
 0x12f   : > { %v396_v19 = vadd.f32 %v395_v18, %v372_v16 }
 0x131   : > { %v413_v3 = vmul.f32 %v406_v20, %v396_v19 }
 0x132   : > { %v375_v24 = vpop.f32.mrf.mxu2 }
 0x133   : > { %v427_v23 = vadd.f32 %v420_v21, %v413_v3 }
 0x135   : > { %vm429_vm10 = vcmp.ge.f32.partialorder %v427_v23, 0.0  ;;  %v431_v25 = vmul.f32 0.01, %v427_v23 }
 0x136   : > { %v398_v26 = vpop.f32.mrf.mxu1 }
 0x137   : > { %v433_v28 = vsel %vm429_vm10, %v427_v23, %v431_v25  ;;  %v399_v29 = vadd.f32 %v398_v26, %v375_v24 }
 0x138   : > { %v441_v30 = vsel %vm440_vm9, %v433_v28, 0.0 }
 0x139   : > { %443 = vst [vmem:[%s231_s28] sm:$0xff] %v441_v30  ;;  %v414_v31 = vmul.f32 %v411_v27, %v399_v29 }
 0x13b   : > { %v428_v33 = vadd.f32 %v425_v32, %v414_v31 }
 0x13d   : > { %vm430_vm11 = vcmp.ge.f32.partialorder %v428_v33, 0.0  ;;  %v432_v34 = vmul.f32 0.01, %v428_v33 }
 0x13f   : > { %v434_v35 = vsel %vm430_vm11, %v428_v33, %v432_v34 }
 0x140   : > { %v442_v36 = vsel %vm440_vm9, %v434_v35, 0.0 }
 0x141   : > { %444 = vst [vmem:[%s231_s28 + $0x8] sm:$0xff] %v442_v36 }
 0x142 PF: > { %s14_s17 = sadd.s32 1, %s700_s17   ;;  %s830_s15 = smov %s696_s16 }
 0x143   : > { %p11_p5 = scmp.ge.s32.totalorder %s14_s17, 8   ;;  %s831_s16 = smov %s833_s18 }
 0x145   :  { %13 = sbr.rel (!%p11_p5) target bundleno = 2 (0x2), region = 66 }

</bundles_post_ra>
